<compile_context>
chip_gen: v7x
topology: tpu7x:2x2x1
jax: 0.10.0
libtpu: 0.0.40
codegen_flags: <defaults>
</compile_context>

<pallas_src>
import jax
import jax.numpy as jnp
from jax.experimental import pallas as pl
from jax.experimental.pallas import tpu as pltpu

P_DROP = 0.4
BN_EPS = 1e-5
DROP_THRESHOLD = int(round(P_DROP * (1 << 32)))        # exact u32 threshold
KEEP_SCALE = 1.0 / (1.0 - P_DROP)

# Set to jnp.bfloat16 on v6e/v7x for ~2x MXU throughput (loosen the reference
# tolerance accordingly).  f32 keeps the check exact and is safe on v5e.
MATMUL_DTYPE = jnp.float32


def block_kernel(x_ref, w_ref, b_ref, g_ref, beta_ref, bits_ref, o_ref):
    # ---- Linear (MXU): y = x @ W + b on this column tile ----
    x = x_ref[...]                                        # (B, in_dim)      f32
    w = w_ref[...]                                        # (in_dim, TN)
    y = jnp.dot(x.astype(MATMUL_DTYPE), w.astype(MATMUL_DTYPE),
                preferred_element_type=jnp.float32) + b_ref[...]

    # ---- BatchNorm1d (training mode), one-pass biased batch stats over axis 0
    inv_n = 1.0 / y.shape[0]
    s1 = jnp.sum(y, axis=0, keepdims=True)                # (1, TN)  XLU reduce
    s2 = jnp.sum(y * y, axis=0, keepdims=True)            # (1, TN)
    mean = s1 * inv_n
    var = s2 * inv_n - mean * mean
    # fold normalize + affine into a single scale/shift (rsqrt -> EUP slot)
    scale = g_ref[...] * jax.lax.rsqrt(var + BN_EPS)      # (1, TN)
    shift = beta_ref[...] - mean * scale                  # (1, TN)
    y = y * scale + shift

    # ---- ReLU (VPU) ----
    y = jnp.maximum(y, 0.0)

    # ---- Dropout: exact integer-threshold compare on u32 random bits ----
    keep = bits_ref[...] >= jnp.uint32(DROP_THRESHOLD)    # P(keep) = 1 - p
    o_ref[...] = jnp.where(keep, y * KEEP_SCALE, 0.0)


def _pick_tile_n(out_dim):
    # Largest lane-dense column tile that divides out_dim (keeps vst unmasked
    # and bounds VMEM when out_dim grows; 512 lanes ~ HBM-roofline sweet spot).
    for cand in (512, 256, 128):
        if out_dim % cand == 0:
            return cand
    return out_dim  # TODO(synk): non-128-multiple out_dim falls back to one masked tile


def block_forward(x, w, b, gamma, beta, dropout_bits):
    B, in_dim = x.shape
    out_dim = w.shape[1]
    tile_n = _pick_tile_n(out_dim)
    grid = (out_dim // tile_n,)

    return pl.pallas_call(
        block_kernel,
        out_shape=jax.ShapeDtypeStruct((B, out_dim), jnp.float32),
        grid=grid,
        in_specs=[
            pl.BlockSpec((B, in_dim), lambda j: (0, 0)),       # x: resident full-K
            pl.BlockSpec((in_dim, tile_n), lambda j: (0, j)),  # W column tile
            pl.BlockSpec((1, tile_n), lambda j: (0, j)),       # bias
            pl.BlockSpec((1, tile_n), lambda j: (0, j)),       # gamma
            pl.BlockSpec((1, tile_n), lambda j: (0, j)),       # beta
            pl.BlockSpec((B, tile_n), lambda j: (0, j)),       # dropout bits (u32)
        ],
        out_specs=pl.BlockSpec((B, tile_n), lambda j: (0, j)),
        compiler_params=pltpu.CompilerParams(
            dimension_semantics=("parallel",)),                # megacore on v7x
    )(x, w, b, gamma, beta, dropout_bits)


if __name__ == "__main__":
    # B multiple of 8 (sublane tile) so no padded rows pollute the batch stats;
    # OUT_DIM multiple of 128 so stores are lane-dense.
    B, IN_DIM, OUT_DIM = 128, 64, 128

    key = jax.random.PRNGKey(0)
    kx, kw, kb, kg, kbt, kd = jax.random.split(key, 6)

    x = jax.random.normal(kx, (B, IN_DIM), dtype=jnp.float32)

    # Deterministic parameter init (same shapes as nn.Linear / nn.BatchNorm1d).
    bound = 1.0 / (IN_DIM ** 0.5)
    w = jax.random.uniform(kw, (IN_DIM, OUT_DIM), jnp.float32, -bound, bound)
    b = jax.random.uniform(kb, (1, OUT_DIM), jnp.float32, -bound, bound)
    gamma = jnp.ones((1, OUT_DIM), jnp.float32) + 0.1 * jax.random.normal(kg, (1, OUT_DIM))
    beta = 0.1 * jax.random.normal(kbt, (1, OUT_DIM), dtype=jnp.float32)

    # Uniform u32 bits for the dropout mask (host-side; portable to interpret mode).
    dropout_bits = jax.random.bits(kd, (B, OUT_DIM), dtype=jnp.uint32)

    out = block_forward(x, w, b, gamma, beta, dropout_bits)
    out = jax.block_until_ready(out)

    # Reference: Linear -> BN(batch stats) -> ReLU -> Dropout with same bits.
    y_ref = x @ w + b
    mean = jnp.mean(y_ref, axis=0, keepdims=True)
    var = jnp.mean((y_ref - mean) ** 2, axis=0, keepdims=True)
    y_ref = (y_ref - mean) * jax.lax.rsqrt(var + BN_EPS) * gamma + beta
    y_ref = jnp.maximum(y_ref, 0.0)
    keep_ref = dropout_bits >= jnp.uint32(DROP_THRESHOLD)
    expected = jnp.where(keep_ref, y_ref * KEEP_SCALE, 0.0)

    assert out.shape == (B, OUT_DIM)
    assert jnp.allclose(out, expected, atol=2e-4, rtol=2e-4), "mismatch vs reference"

    print("KERNEL_OK")
</pallas_src>

<mosaic_0001>
module attributes {stable_mosaic.version = 11 : i64} {
  func.func @block_kernel(%arg0: i32, %arg1: memref<128x64xf32, #tpu.memory_space<vmem>>, %arg2: memref<64x128xf32, #tpu.memory_space<vmem>>, %arg3: memref<1x128xf32, #tpu.memory_space<vmem>>, %arg4: memref<1x128xf32, #tpu.memory_space<vmem>>, %arg5: memref<1x128xf32, #tpu.memory_space<vmem>>, %arg6: memref<128x128xi32, #tpu.memory_space<vmem>>, %arg7: memref<128x128xf32, #tpu.memory_space<vmem>>) attributes {dimension_semantics = [#tpu.dimension_semantics<parallel>], iteration_bounds = array<i64: 1>, scalar_prefetch = 0 : i64, scratch_operands = 0 : i64, tpu.core_type = #tpu.core_type<tc>, window_params = [{pipeline_mode = #tpu.pipeline_mode<synchronous>, transform_indices = @transform_0, window_bounds = array<i64: 128, 64>}, {transform_indices = @transform_1, window_bounds = array<i64: 64, 128>}, {transform_indices = @transform_2, window_bounds = array<i64: 1, 128>}, {transform_indices = @transform_3, window_bounds = array<i64: 1, 128>}, {transform_indices = @transform_4, window_bounds = array<i64: 1, 128>}, {transform_indices = @transform_5, window_bounds = array<i64: 128, 128>}, {transform_indices = @transform_6, window_bounds = array<i64: 128, 128>}]} {
    %c0 = arith.constant 0 : index
    %c0_0 = arith.constant 0 : index
    %0 = vector.load %arg1[%c0, %c0_0] : memref<128x64xf32, #tpu.memory_space<vmem>>, vector<128x64xf32>
    %c0_1 = arith.constant 0 : index
    %c0_2 = arith.constant 0 : index
    %1 = vector.load %arg2[%c0_1, %c0_2] : memref<64x128xf32, #tpu.memory_space<vmem>>, vector<64x128xf32>
    %cst = arith.constant dense<0.000000e+00> : vector<128x128xf32>
    %2 = tpu.matmul %0, %1, %cst {dimension_numbers = #tpu.dot_dimension_numbers<[1], [0], [0], [1], [0, 0, 1, 1], [], []>} : vector<128x64xf32>, vector<64x128xf32>, vector<128x128xf32> -> vector<128x128xf32>
    %c0_3 = arith.constant 0 : index
    %c0_4 = arith.constant 0 : index
    %3 = vector.load %arg3[%c0_3, %c0_4] : memref<1x128xf32, #tpu.memory_space<vmem>>, vector<1x128xf32>
    %4 = vector.broadcast %3 : vector<1x128xf32> to vector<128x128xf32>
    %5 = arith.addf %2, %4 : vector<128x128xf32>
    %cst_5 = arith.constant dense<0.000000e+00> : vector<128xf32>
    %6 = vector.multi_reduction <add>, %5, %cst_5 [0] : vector<128x128xf32> to vector<128xf32>
    %7 = vector.shape_cast %6 : vector<128xf32> to vector<1x128xf32>
    %8 = arith.mulf %5, %5 : vector<128x128xf32>
    %cst_6 = arith.constant dense<0.000000e+00> : vector<128xf32>
    %9 = vector.multi_reduction <add>, %8, %cst_6 [0] : vector<128x128xf32> to vector<128xf32>
    %10 = vector.shape_cast %9 : vector<128xf32> to vector<1x128xf32>
    %cst_7 = arith.constant 7.812500e-03 : f32
    %11 = vector.broadcast %cst_7 : f32 to vector<1x128xf32>
    %12 = arith.mulf %7, %11 : vector<1x128xf32>
    %cst_8 = arith.constant 7.812500e-03 : f32
    %13 = vector.broadcast %cst_8 : f32 to vector<1x128xf32>
    %14 = arith.mulf %10, %13 : vector<1x128xf32>
    %15 = arith.mulf %12, %12 : vector<1x128xf32>
    %16 = arith.subf %14, %15 : vector<1x128xf32>
    %c0_9 = arith.constant 0 : index
    %c0_10 = arith.constant 0 : index
    %17 = vector.load %arg4[%c0_9, %c0_10] : memref<1x128xf32, #tpu.memory_space<vmem>>, vector<1x128xf32>
    %cst_11 = arith.constant 9.99999974E-6 : f32
    %18 = vector.broadcast %cst_11 : f32 to vector<1x128xf32>
    %19 = arith.addf %16, %18 : vector<1x128xf32>
    %20 = math.rsqrt %19 : vector<1x128xf32>
    %21 = arith.mulf %17, %20 : vector<1x128xf32>
    %c0_12 = arith.constant 0 : index
    %c0_13 = arith.constant 0 : index
    %22 = vector.load %arg5[%c0_12, %c0_13] : memref<1x128xf32, #tpu.memory_space<vmem>>, vector<1x128xf32>
    %23 = arith.mulf %12, %21 : vector<1x128xf32>
    %24 = arith.subf %22, %23 : vector<1x128xf32>
    %25 = vector.broadcast %21 : vector<1x128xf32> to vector<128x128xf32>
    %26 = arith.mulf %5, %25 : vector<128x128xf32>
    %27 = vector.broadcast %24 : vector<1x128xf32> to vector<128x128xf32>
    %28 = arith.addf %26, %27 : vector<128x128xf32>
    %cst_14 = arith.constant 0.000000e+00 : f32
    %29 = vector.broadcast %cst_14 : f32 to vector<128x128xf32>
    %30 = arith.maximumf %28, %29 : vector<128x128xf32>
    %c0_15 = arith.constant 0 : index
    %c0_16 = arith.constant 0 : index
    %31 = vector.load %arg6[%c0_15, %c0_16] : memref<128x128xi32, #tpu.memory_space<vmem>>, vector<128x128xi32>
    %c1717986918_i32 = arith.constant 1717986918 : i32
    %32 = vector.broadcast %c1717986918_i32 : i32 to vector<128x128xi32>
    %33 = arith.cmpi uge, %31, %32 : vector<128x128xi32>
    %cst_17 = arith.constant 1.66666663 : f32
    %34 = vector.broadcast %cst_17 : f32 to vector<128x128xf32>
    %35 = arith.mulf %30, %34 : vector<128x128xf32>
    %cst_18 = arith.constant 0.000000e+00 : f32
    %36 = vector.broadcast %cst_18 : f32 to vector<128x128xf32>
    %37 = arith.select %33, %35, %36 : vector<128x128xi1>, vector<128x128xf32>
    %c0_19 = arith.constant 0 : index
    %c0_20 = arith.constant 0 : index
    %38 = vector.load %arg7[%c0_19, %c0_20] : memref<128x128xf32, #tpu.memory_space<vmem>>, vector<128x128xf32>
    tpu.vector_store %arg7[%c0_19, %c0_20], %37 {strides = array<i32>} : memref<128x128xf32, #tpu.memory_space<vmem>>, vector<128x128xf32>,
    return
  }
  func.func @transform_0(%arg0: i32) -> (i32, i32) {
    %c0_i32 = arith.constant 0 : i32
    %c0_i32_0 = arith.constant 0 : i32
    %c0_i32_1 = arith.constant 0 : i32
    return %c0_i32, %c0_i32_0 : i32, i32
  }
  func.func @transform_1(%arg0: i32) -> (i32, i32) {
    %c0_i32 = arith.constant 0 : i32
    %c0_i32_0 = arith.constant 0 : i32
    return %c0_i32, %arg0 : i32, i32
  }
  func.func @transform_2(%arg0: i32) -> (i32, i32) {
    %c0_i32 = arith.constant 0 : i32
    %c0_i32_0 = arith.constant 0 : i32
    return %c0_i32, %arg0 : i32, i32
  }
  func.func @transform_3(%arg0: i32) -> (i32, i32) {
    %c0_i32 = arith.constant 0 : i32
    %c0_i32_0 = arith.constant 0 : i32
    return %c0_i32, %arg0 : i32, i32
  }
  func.func @transform_4(%arg0: i32) -> (i32, i32) {
    %c0_i32 = arith.constant 0 : i32
    %c0_i32_0 = arith.constant 0 : i32
    return %c0_i32, %arg0 : i32, i32
  }
  func.func @transform_5(%arg0: i32) -> (i32, i32) {
    %c0_i32 = arith.constant 0 : i32
    %c0_i32_0 = arith.constant 0 : i32
    return %c0_i32, %arg0 : i32, i32
  }
  func.func @transform_6(%arg0: i32) -> (i32, i32) {
    %c0_i32 = arith.constant 0 : i32
    %c0_i32_0 = arith.constant 0 : i32
    return %c0_i32, %arg0 : i32, i32
  }
}

</mosaic_0001>

<bundles_post_ra>
// kernel: tpu_custom_call.1
= control target key start
LH: loop header
LB: loop body
LE: loop exit
PB: predicated region body
PF: predicated region fallthrough
CT: control target
= control target key end

     0   :  { %vm55_vm0 = vcmask 523264   ;;  %s995_s0 = inlined_call_operand.vmem [shape: f32[128,64], index: 0, kind: input, shape index: {}]   ;;  %s996_s1 = inlined_call_operand.vmem [shape: f32[64,128], index: 1, kind: input, shape index: {}]   ;;  %s997_s2 = inlined_call_operand.vmem [shape: f32[1,128], index: 2, kind: input, shape index: {}]   ;;  %s998_s3 = inlined_call_operand.vmem [shape: f32[1,128], index: 3, kind: input, shape index: {}]   ;;  %s999_s4 = inlined_call_operand.vmem [shape: f32[1,128], index: 4, kind: input, shape index: {}]   ;;  %s1000_s5 = inlined_call_operand.vmem [shape: u32[128,128], index: 5, kind: input, shape index: {}]   ;;  %s1001_s6 = inlined_call_operand.hbm [shape: f32[128,128], index: 6, kind: output, shape index: {}]  }
   0x1   :  { %v40_v0 = vld [vmem:[%s996_s1] sm:$0xff]  ;;  %v41_v1 = vld [vmem:[%s996_s1 + $0x8] sm:$0xff]  ;;  %v42_v2 = vld [vmem:[%s996_s1 + $0x10] sm:$0xff] }
   0x2   :  { %v555_v3 = vpack.c.bf16 %v41_v1, %v40_v0  ;;  %v43_v4 = vld [vmem:[%s996_s1 + $0x18] sm:$0xff]  ;;  %v44_v6 = vld [vmem:[%s996_s1 + $0x20] sm:$0xff]  ;;  %v45_v7 = vld [vmem:[%s996_s1 + $0x28] sm:$0xff] }
   0x3   :  { %v559_v5 = vpack.c.bf16 %v43_v4, %v42_v2  ;;  %v24_v8 = vld [vmem:[%s995_s0] sm:$0xff]  ;;  %v563_v9 = vpack.c.bf16 %v45_v7, %v44_v6  ;;  %v46_v11 = vld [vmem:[%s996_s1 + $0x30] sm:$0xff]  ;;  %v47_v12 = vld [vmem:[%s996_s1 + $0x38] sm:$0xff] }
   0x4   :  { %556 = vmatprep.subr.bf16.mxu0 %v555_v3  ;;  %571 = vmatprep.subr.bf16.mxu1 %v555_v3  ;;  %v32_v10 = vld [vmem:[%s995_s0 + $0x40] sm:$0xff] }
   0x5   :  { %558 = vmatpush3.bf16.msra.mxu0 %v555_v3  ;;  %531 = vmatprep.mubr.msk.f32.mxu0 %vm55_vm0, %v24_v8 }
   0x6   :  { %560 = vmatprep.subr.bf16.mxu0 %v559_v5  ;;  %575 = vmatpush3.bf16.msra.mxu1 %v555_v3 }
   0x7   :  { %572 = vmatprep.subr.bf16.mxu1 %v559_v5  ;;  %543 = vmatprep.mubr.msk.f32.mxu1 %vm55_vm0, %v32_v10 }
   0x9   :  { %562 = vmatpush3.bf16.msra.mxu0 %v559_v5 }
   0xa   :  { %11 = vsyncpa [#allocation3], 0  ;;  %564 = vmatprep.subr.bf16.mxu0 %v563_v9  ;;  %v567_v13 = vpack.c.bf16 %v47_v12, %v46_v11  ;;  %576 = vmatpush3.bf16.msra.mxu1 %v559_v5  ;;  %v25_v14 = vld [vmem:[%s995_s0 + $0x8] sm:$0xff]  ;;  %v26_v15 = vld [vmem:[%s995_s0 + $0x10] sm:$0xff] }
   0xb   :  { %573 = vmatprep.subr.bf16.mxu1 %v563_v9  ;;  %v33_v16 = vld [vmem:[%s995_s0 + $0x48] sm:$0xff]  ;;  %v34_v17 = vld [vmem:[%s995_s0 + $0x50] sm:$0xff]  ;;  %v27_v18 = vld [vmem:[%s995_s0 + $0x18] sm:$0xff] }
   0xc   :  { %v28_v19 = vld [vmem:[%s995_s0 + $0x20] sm:$0xff]  ;;  %v35_v20 = vld [vmem:[%s995_s0 + $0x58] sm:$0xff]  ;;  %v29_v22 = vld [vmem:[%s995_s0 + $0x28] sm:$0xff] }
   0xd   :  { %566 = vmatpush3.bf16.msra.mxu0 %v563_v9  ;;  %v36_v21 = vld [vmem:[%s995_s0 + $0x60] sm:$0xff]  ;;  %v30_v23 = vld [vmem:[%s995_s0 + $0x30] sm:$0xff]  ;;  %v37_v24 = vld [vmem:[%s995_s0 + $0x68] sm:$0xff] }
   0xe   :  { %568 = vmatprep.subr.bf16.mxu0 %v567_v13  ;;  %577 = vmatpush3.bf16.msra.mxu1 %v563_v9  ;;  %v38_v25 = vld [vmem:[%s995_s0 + $0x70] sm:$0xff]  ;;  %v31_v26 = vld [vmem:[%s995_s0 + $0x38] sm:$0xff]  ;;  %v737_v28 = vld [vmem:[%s997_s2] ss:$0 sm:$0xff] }
   0xf   :  { %574 = vmatprep.subr.bf16.mxu1 %v567_v13  ;;  %v39_v27 = vld [vmem:[%s995_s0 + $0x78] sm:$0xff] }
  0x11   :  { %570 = vmatpush3.bf16.msra.mxu0 %v567_v13 }
  0x12   :  { %578 = vmatpush3.bf16.msra.mxu1 %v567_v13 }
  0x14   :  { %532 = vmatmul.mubr.msk.f32.vlgmr.msra.gmra.mrb[0].mxu0 %vm55_vm0, %v25_v14 }
  0x15   :  { %534 = vmatprep.mubr.msk.f32.mxu0 %vm55_vm0, %v26_v15  ;;  %544 = vmatmul.mubr.msk.f32.vlgmr.msra.gmra.mrb[0].mxu1 %vm55_vm0, %v33_v16 }
  0x16   :  { %546 = vmatprep.mubr.msk.f32.mxu1 %vm55_vm0, %v34_v17 }
  0x18   :  { %535 = vmatmul.mubr.msk.f32.gmra.mrb[2].mxu0 %vm55_vm0, %v27_v18 }
  0x19   :  { %537 = vmatprep.mubr.msk.f32.mxu0 %vm55_vm0, %v28_v19  ;;  %547 = vmatmul.mubr.msk.f32.gmra.mrb[2].mxu1 %vm55_vm0, %v35_v20 }
  0x1a   :  { %549 = vmatprep.mubr.msk.f32.mxu1 %vm55_vm0, %v36_v21 }
  0x1c   :  { %538 = vmatmul.mubr.msk.f32.gmra.mrb[4].mxu0 %vm55_vm0, %v29_v22 }
  0x1d   :  { %540 = vmatprep.mubr.msk.f32.mxu0 %vm55_vm0, %v30_v23  ;;  %550 = vmatmul.mubr.msk.f32.gmra.mrb[4].mxu1 %vm55_vm0, %v37_v24 }
  0x1e   :  { %552 = vmatprep.mubr.msk.f32.mxu1 %vm55_vm0, %v38_v25 }
  0x20   :  { %541 = vmatmul.mubr.msk.f32.gmra.mrb[6].mxu0 %vm55_vm0, %v31_v26 }
  0x21   :  { %553 = vmatmul.mubr.msk.f32.gmra.mrb[6].mxu1 %vm55_vm0, %v39_v27 }
  0xe7   :  { %v533_v29 = vpop.f32.mrb[0].mxu0 }
  0xe8   :  { %v740_v30 = vadd.f32 %v533_v29, %v737_v28  ;;  %v170_v31 = vpop.f32.mrb[1].mxu0  ;;  %v545_v32 = vpop.f32.mrb[0].mxu1 }
  0xe9   :  { %v743_v33 = vadd.f32 %v737_v28, %v170_v31  ;;  %v210_v34 = vpop.f32.mrb[1].mxu1  ;;  %v788_v8 = vadd.f32 %v545_v32, %v737_v28 }
  0xea   :  { %v271_v35 = vmul.f32 %v740_v30, %v740_v30  ;;  %v775_v62 = vadd.f32 %v737_v28, %v210_v34 }
  0xeb   :  { %v270_v36 = vmul.f32 %v743_v33, %v743_v33  ;;  %v536_v37 = vpop.f32.mrb[2].mxu0  ;;  %v249_v40 = vadd.f32 %v740_v30, %v743_v33  ;;  %v279_v16 = vmul.f32 %v788_v8, %v788_v8 }
  0xec   :  { %v180_v38 = vpop.f32.mrb[3].mxu0  ;;  %v548_v39 = vpop.f32.mrb[2].mxu1  ;;  %v752_v41 = vadd.f32 %v536_v37, %v737_v28  ;;  %v278_v9 = vmul.f32 %v775_v62, %v775_v62 }
  0xed   :  { %v755_v42 = vadd.f32 %v737_v28, %v180_v38  ;;  %v220_v43 = vpop.f32.mrb[3].mxu1  ;;  %v286_v44 = vadd.f32 %v271_v35, %v270_v36  ;;  %v802_v17 = vadd.f32 %v548_v39, %v737_v28 }
  0xee   :  { %v273_v51 = vmul.f32 %v752_v41, %v752_v41  ;;  %v796_v13 = vadd.f32 %v737_v28, %v220_v43 }
  0xef   :  { %v250_v45 = vadd.f32 %v249_v40, %v755_v42  ;;  %v272_v46 = vmul.f32 %v755_v42, %v755_v42  ;;  %v539_v47 = vpop.f32.mrb[4].mxu0  ;;  %v281_v24 = vmul.f32 %v802_v17, %v802_v17 }
  0xf0   :  { %v761_v48 = vadd.f32 %v539_v47, %v737_v28  ;;  %v190_v49 = vpop.f32.mrb[5].mxu0  ;;  %v551_v50 = vpop.f32.mrb[4].mxu1  ;;  %v280_v20 = vmul.f32 %v796_v13, %v796_v13 }
  0xf1   :  { %v287_v52 = vadd.f32 %v286_v44, %v272_v46  ;;  %v766_v53 = vadd.f32 %v737_v28, %v190_v49  ;;  %v251_v54 = vadd.f32 %v250_v45, %v752_v41  ;;  %v230_v55 = vpop.f32.mrb[5].mxu1  ;;  %v814_v25 = vadd.f32 %v551_v50, %v737_v28 }
  0xf2   :  { %v275_v60 = vmul.f32 %v761_v48, %v761_v48  ;;  %v808_v21 = vadd.f32 %v737_v28, %v230_v55 }
  0xf3   :  { %v252_v56 = vadd.f32 %v251_v54, %v766_v53  ;;  %v274_v57 = vmul.f32 %v766_v53, %v766_v53  ;;  %v288_v58 = vadd.f32 %v287_v52, %v273_v51  ;;  %v542_v59 = vpop.f32.mrb[6].mxu0  ;;  %v283_v35 = vmul.f32 %v814_v25, %v814_v25 }
  0xf4   :  { %v200_v61 = vpop.f32.mrb[7].mxu0  ;;  %v554_v63 = vpop.f32.mrb[6].mxu1  ;;  %v778_v1 = vadd.f32 %v542_v59, %v737_v28  ;;  %v282_v29 = vmul.f32 %v808_v21, %v808_v21 }
  0xf5   :  { %v289_v0 = vadd.f32 %v288_v58, %v274_v57  ;;  %v781_v2 = vadd.f32 %v737_v28, %v200_v61  ;;  %v253_v3 = vadd.f32 %v252_v56, %v761_v48  ;;  %v240_v4 = vpop.f32.mrb[7].mxu1  ;;  %v246_v37 = vadd.f32 %v554_v63, %v737_v28 }
  0xf6   :  { %v277_v10 = vmul.f32 %v778_v1, %v778_v1  ;;  %v241_v31 = vadd.f32 %v737_v28, %v240_v4 }
  0xf7   :  { %v254_v5 = vadd.f32 %v253_v3, %v781_v2  ;;  %v276_v6 = vmul.f32 %v781_v2, %v781_v2  ;;  %v290_v7 = vadd.f32 %v289_v0, %v275_v60  ;;  %v285_v44 = vmul.f32 %v246_v37, %v246_v37 }
  0xf8   :  { %v284_v39 = vmul.f32 %v241_v31, %v241_v31 }
  0xf9   :  { %v291_v11 = vadd.f32 %v290_v7, %v276_v6  ;;  %v255_v12 = vadd.f32 %v254_v5, %v778_v1  ;;  %v319_v5 = vlaneseq  ;;  %v311_v7 = vld [vmem:[%s998_s3] sm:$0x1] }
  0xfb   :  { %v256_v14 = vadd.f32 %v255_v12, %v775_v62  ;;  %v292_v15 = vadd.f32 %v291_v11, %v277_v10  ;;  %v320_v6 = vshrl.u32 %v319_v5, 7  ;;  %v831_v12 = vld [vmem:[%s1000_s5 + $0x70] sm:$0xff] }
  0xfc   :  { %vm408_vm1 = vcmp.ge.u32.totalorder %v831_v12, 1717986918 }
  0xfd   :  { %v293_v18 = vadd.f32 %v292_v15, %v278_v9  ;;  %v257_v19 = vadd.f32 %v256_v14, %v788_v8  ;;  %v321_v9 = vsub.s32 0, %v320_v6  ;;  %v315_v14 = vld [vmem:[%s999_s4] sm:$0x1] }
  0xff   :  { %v258_v22 = vadd.f32 %v257_v19, %v796_v13  ;;  %v294_v23 = vadd.f32 %v293_v18, %v279_v16 }
 0x101   :  { %v295_v26 = vadd.f32 %v294_v23, %v280_v20  ;;  %v259_v27 = vadd.f32 %v258_v22, %v802_v17 }
 0x103   :  { %v260_v32 = vadd.f32 %v259_v27, %v808_v21  ;;  %v296_v34 = vadd.f32 %v295_v26, %v281_v24 }
 0x105   :  { %v297_v36 = vadd.f32 %v296_v34, %v282_v29  ;;  %v261_v38 = vadd.f32 %v260_v32, %v814_v25 }
 0x107   :  { %v262_v40 = vadd.f32 %v261_v38, %v241_v31  ;;  %v298_v43 = vadd.f32 %v297_v36, %v283_v35 }
 0x109   :  { %v263_v45 = vadd.f32 %v262_v40, %v246_v37  ;;  %v299_v46 = vadd.f32 %v298_v43, %v284_v39  ;;  %v886_v39 = vld [vmem:[%s1000_s5 + $0x30] sm:$0xff]  ;;  %v891_v40 = vld [vmem:[%s1000_s5 + $0x38] sm:$0xff]  ;;  %v896_v43 = vld [vmem:[%s1000_s5 + $0x40] sm:$0xff] }
 0x10a   :  { %vm400_vm8 = vcmp.ge.u32.totalorder %v886_v39, 1717986918  ;;  %vm401_vm9 = vcmp.ge.u32.totalorder %v891_v40, 1717986918  ;;  %vm402_vm10 = vcmp.ge.u32.totalorder %v896_v43, 1717986918 }
 0x10b   :  { %v264_v47 = vrot.slane %v263_v45, 4  ;;  %v300_v49 = vadd.f32 %v299_v46, %v285_v44 }
 0x10d   :  { %v265_v50 = vadd.f32 %v264_v47, %v263_v45  ;;  %v301_v51 = vrot.slane %v300_v49, 4 }
 0x10f   :  { %v266_v52 = vrot.slane %v265_v50, 2  ;;  %v302_v54 = vadd.f32 %v301_v51, %v300_v49  ;;  %v901_v49 = vld [vmem:[%s1000_s5 + $0x48] sm:$0xff]  ;;  %v911_v51 = vld [vmem:[%s1000_s5 + $0x58] sm:$0xff] }
 0x110   :  { %vm403_vm11 = vcmp.ge.u32.totalorder %v901_v49, 1717986918  ;;  %vm405_vm13 = vcmp.ge.u32.totalorder %v911_v51, 1717986918 }
 0x111   :  { %v267_v55 = vadd.f32 %v266_v52, %v265_v50  ;;  %v303_v56 = vrot.slane %v302_v54, 2  ;;  %v906_v50 = vld [vmem:[%s1000_s5 + $0x50] sm:$0xff] }
 0x112   :  { %vm404_vm12 = vcmp.ge.u32.totalorder %v906_v50, 1717986918 }
 0x113   :  { %v268_v57 = vrot.slane %v267_v55, 1  ;;  %v304_v58 = vadd.f32 %v303_v56, %v302_v54 }
 0x115   :  { %v269_v59 = vadd.f32 %v268_v57, %v267_v55  ;;  %v305_v28 = vrot.slane %v304_v58, 1  ;;  %v916_v57 = vld [vmem:[%s1000_s5 + $0x60] sm:$0xff] }
 0x116   :  { %vm406_vm14 = vcmp.ge.u32.totalorder %v916_v57, 1717986918 }
 0x117   :  { %v306_v60 = vadd.f32 %v305_v28, %v304_v58  ;;  %v307_v61 = vmul.f32 0.0078125, %v269_v59  ;;  %v921_v58 = vld [vmem:[%s1000_s5 + $0x68] sm:$0xff]  ;;  %v926_v59 = vld [vmem:[%s1000_s5 + $0x78] sm:$0xff] }
 0x118   :  { %vm407_vm15 = vcmp.ge.u32.totalorder %v921_v58, 1717986918  ;;  %vm409_vm0 = vcmp.ge.u32.totalorder %v926_v59, 1717986918 }
 0x119   :  { %v308_v63 = vmul.f32 0.0078125, %v306_v60  ;;  %v309_v0 = vmul.f32 %v307_v61, %v307_v61 }
 0x11b   :  { %v310_v3 = vsub.f32 %v308_v63, %v309_v0 }
 0x11d   :  { %v312_v4 = vadd.f32 1e-05, %v310_v3 }
 0x11f   :  { %582 = vrsqrt.f32 %v312_v4 }
 0x129   :  { %v583_v10 = vpop.eup %582 }
 0x12a   :  { %v314_v11 = vmul.f32 %v583_v10, %v311_v7 }
 0x12c   :  { %v316_v15 = vmul.f32 %v314_v11, %v307_v61  ;;  %v322_v16 = vrot.slane %v314_v11, %v321_v9 }
 0x12e   :  { %v317_v18 = vsub.f32 %v315_v14, %v316_v15  ;;  %v338_v19 = vmul.f32 %v322_v16, %v241_v31  ;;  %v324_v20 = vmul.f32 %v322_v16, %v743_v33  ;;  %v325_v22 = vmul.f32 %v322_v16, %v740_v30 }
 0x12f   :  { %v326_v23 = vmul.f32 %v322_v16, %v755_v42  ;;  %v327_v24 = vmul.f32 %v322_v16, %v752_v41  ;;  %v328_v26 = vmul.f32 %v322_v16, %v766_v53  ;;  %v329_v27 = vmul.f32 %v322_v16, %v761_v48  ;;  %v853_v41 = vld [vmem:[%s1000_s5] sm:$0xff]  ;;  %v858_v48 = vld [vmem:[%s1000_s5 + $0x8] sm:$0xff]  ;;  %v863_v53 = vld [vmem:[%s1000_s5 + $0x10] sm:$0xff] }
 0x130   :  { %v344_v29 = vrot.slane %v317_v18, %v321_v9  ;;  %v330_v32 = vmul.f32 %v322_v16, %v781_v2  ;;  %v331_v34 = vmul.f32 %v322_v16, %v778_v1  ;;  %v332_v35 = vmul.f32 %v322_v16, %v775_v62 }
 0x131   :  { %v333_v31 = vmul.f32 %v322_v16, %v788_v8  ;;  %v334_v33 = vmul.f32 %v322_v16, %v796_v13  ;;  %v335_v30 = vmul.f32 %v322_v16, %v802_v17  ;;  %v336_v42 = vmul.f32 %v322_v16, %v808_v21  ;;  %v871_v13 = vld [vmem:[%s1000_s5 + $0x18] sm:$0xff]  ;;  %v876_v17 = vld [vmem:[%s1000_s5 + $0x20] sm:$0xff]  ;;  %v881_v21 = vld [vmem:[%s1000_s5 + $0x28] sm:$0xff]  ;;  %s608_s5 = smov [#allocation2]  }
 0x132   :  { %v360_v62 = vadd.f32 %v344_v29, %v338_v19  ;;  %v337_v1 = vmul.f32 %v322_v16, %v814_v25  ;;  %v339_v2 = vmul.f32 %v322_v16, %v246_v37  ;;  %v866_v8 = vadd.f32 %v344_v29, %v324_v20  ;;  %s463_s4 = sshll.u32 %s608_s5, 4  ;;  %s962_s4 = int_to_ptr.vmem [resolvable:$true] %s463_s4 }
 0x133   :  { %v347_v36 = vadd.f32 %v344_v29, %v325_v22  ;;  %v348_v25 = vadd.f32 %v344_v29, %v326_v23  ;;  %v349_v37 = vadd.f32 %v344_v29, %v327_v24  ;;  %v350_v38 = vadd.f32 %v344_v29, %v328_v26  ;;  %s584_s25 = scalar_lea.vmem %s962_s4, 2048  ;;  %p589_p1 = scmp.lt.s32.totalorder %s962_s4, %s962_s4 }
 0x134   :  { %v376_v44 = vmax.f32 %v360_v62, 0.0  ;;  %v351_v45 = vadd.f32 %v344_v29, %v329_v27  ;;  %v352_v46 = vadd.f32 %v344_v29, %v330_v32  ;;  %v353_v47 = vadd.f32 %v344_v29, %v331_v34  ;;  %p585_p0 = scmp.ne.s32.totalorder %s962_s4, %s584_s25  ;;  %p590_p2 = scmp.lt.s32.totalorder %s584_s25, %s584_s25 }
 0x135   :  { %v354_v52 = vadd.f32 %v344_v29, %v332_v35  ;;  %v355_v54 = vadd.f32 %v344_v29, %v333_v31  ;;  %v356_v55 = vadd.f32 %v344_v29, %v334_v33  ;;  %v357_v56 = vadd.f32 %v344_v29, %v335_v30 }
 0x136   :  { %vm394_vm2 = vcmp.ge.u32.totalorder %v853_v41, 1717986918  ;;  %vm395_vm3 = vcmp.ge.u32.totalorder %v858_v48, 1717986918  ;;  %vm396_vm4 = vcmp.ge.u32.totalorder %v863_v53, 1717986918  ;;  %v358_v60 = vadd.f32 %v344_v29, %v336_v42  ;;  %p591_p3 = por %p590_p2, %p589_p1 }
 0x137   :  { %vm397_vm5 = vcmp.ge.u32.totalorder %v871_v13, 1717986918  ;;  %v424_v28 = vmul.f32 1.6666666, %v376_v44  ;;  %v359_v61 = vadd.f32 %v344_v29, %v337_v1  ;;  %v361_v63 = vadd.f32 %v344_v29, %v339_v2 }
 0x138   :  { %vm398_vm6 = vcmp.ge.u32.totalorder %v876_v17, 1717986918  ;;  %vm399_vm7 = vcmp.ge.u32.totalorder %v881_v21, 1717986918  ;;  %v362_v0 = vmax.f32 %v866_v8, 0.0  ;;  %v363_v3 = vmax.f32 %v347_v36, 0.0  ;;  %p592_p4 = pnand %p591_p3, %p585_p0 }
 0x139   :  { %v364_v4 = vmax.f32 %v348_v25, 0.0  ;;  %v365_v5 = vmax.f32 %v349_v37, 0.0  ;;  %v440_v6 = vsel %vm408_vm1, %v424_v28, 0.0  ;;  %v366_v7 = vmax.f32 %v350_v38, 0.0 }
 0x13a   :  { %v367_v9 = vmax.f32 %v351_v45, 0.0  ;;  %v368_v10 = vmax.f32 %v352_v46, 0.0  ;;  %456 = vst [vmem:[#allocation2 + $0x70] sm:$0xff] %v440_v6  ;;  %v369_v11 = vmax.f32 %v353_v47, 0.0  ;;  %v370_v14 = vmax.f32 %v354_v52, 0.0 }
 0x13b   :  { %v371_v15 = vmax.f32 %v355_v54, 0.0  ;;  %v372_v16 = vmax.f32 %v356_v55, 0.0  ;;  %v373_v18 = vmax.f32 %v357_v56, 0.0  ;;  %v374_v19 = vmax.f32 %v358_v60, 0.0 }
 0x13c   :  { %v375_v20 = vmax.f32 %v359_v61, 0.0  ;;  %v377_v22 = vmax.f32 %v361_v63, 0.0  ;;  %v410_v12 = vmul.f32 1.6666666, %v362_v0  ;;  %v411_v23 = vmul.f32 1.6666666, %v363_v3 }
 0x13d   :  { %v412_v24 = vmul.f32 1.6666666, %v364_v4  ;;  %v413_v26 = vmul.f32 1.6666666, %v365_v5  ;;  %v414_v27 = vmul.f32 1.6666666, %v366_v7 }
 0x13e   :  { %v415_v29 = vmul.f32 1.6666666, %v367_v9  ;;  %v416_v32 = vmul.f32 1.6666666, %v368_v10  ;;  %v417_v34 = vmul.f32 1.6666666, %v369_v11 }
 0x13f   :  { %v418_v35 = vmul.f32 1.6666666, %v370_v14  ;;  %v419_v31 = vmul.f32 1.6666666, %v371_v15  ;;  %v420_v33 = vmul.f32 1.6666666, %v372_v16 }
 0x140   :  { %v421_v30 = vmul.f32 1.6666666, %v373_v18  ;;  %v422_v42 = vmul.f32 1.6666666, %v374_v19  ;;  %v423_v62 = vmul.f32 1.6666666, %v375_v20 }
 0x141   :  { %v425_v1 = vmul.f32 1.6666666, %v377_v22  ;;  %v426_v2 = vsel %vm394_vm2, %v410_v12, 0.0  ;;  %v427_v8 = vsel %vm395_vm3, %v411_v23, 0.0  ;;  %v428_v36 = vsel %vm396_vm4, %v412_v24, 0.0 }
 0x142   :  { %v429_v25 = vsel %vm397_vm5, %v413_v26, 0.0  ;;  %v430_v37 = vsel %vm398_vm6, %v414_v27, 0.0  ;;  %v431_v38 = vsel %vm399_vm7, %v415_v29, 0.0  ;;  %v432_v44 = vsel %vm400_vm8, %v416_v32, 0.0  ;;  %442 = vst [vmem:[#allocation2] sm:$0xff] %v426_v2  ;;  %443 = vst [vmem:[#allocation2 + $0x8] sm:$0xff] %v427_v8 }
 0x143   :  { %v433_v41 = vsel %vm401_vm9, %v417_v34, 0.0  ;;  %444 = vst [vmem:[#allocation2 + $0x10] sm:$0xff] %v428_v36  ;;  %445 = vst [vmem:[#allocation2 + $0x18] sm:$0xff] %v429_v25  ;;  %v434_v48 = vsel %vm402_vm10, %v418_v35, 0.0  ;;  %v435_v53 = vsel %vm403_vm11, %v419_v31, 0.0  ;;  %v436_v13 = vsel %vm404_vm12, %v420_v33, 0.0 }
 0x144   :  { %v437_v17 = vsel %vm405_vm13, %v421_v30, 0.0  ;;  %446 = vst [vmem:[#allocation2 + $0x20] sm:$0xff] %v430_v37  ;;  %447 = vst [vmem:[#allocation2 + $0x28] sm:$0xff] %v431_v38  ;;  %v438_v21 = vsel %vm406_vm14, %v422_v42, 0.0  ;;  %v439_v39 = vsel %vm407_vm15, %v423_v62, 0.0  ;;  %v441_v40 = vsel %vm409_vm0, %v425_v1, 0.0 }
 0x145   :  { %448 = vst [vmem:[#allocation2 + $0x30] sm:$0xff] %v432_v44  ;;  %449 = vst [vmem:[#allocation2 + $0x38] sm:$0xff] %v433_v41 }
 0x146   :  { %450 = vst [vmem:[#allocation2 + $0x40] sm:$0xff] %v434_v48  ;;  %451 = vst [vmem:[#allocation2 + $0x48] sm:$0xff] %v435_v53 }
 0x147   :  { %452 = vst [vmem:[#allocation2 + $0x50] sm:$0xff] %v436_v13  ;;  %453 = vst [vmem:[#allocation2 + $0x58] sm:$0xff] %v437_v17 }
 0x148   :  { %454 = vst [vmem:[#allocation2 + $0x60] sm:$0xff] %v438_v21  ;;  %455 = vst [vmem:[#allocation2 + $0x68] sm:$0xff] %v439_v39 }
 0x149   :  { %457 = vst [vmem:[#allocation2 + $0x78] sm:$0xff] %v441_v40 }
 0x14a   :  { %595 = shalt.err (!%p592_p4)
}
 0x14b   :  { %s596_s28 = scalar_lea.hbm %s1001_s6, 2048 }
 0x14c   :  { %p597_p5 = scmp.ne.s32.totalorder %s1001_s6, %s596_s28  ;;  %p600_p6 = scmp.lt.u32.totalorder %s596_s28, %s1001_s6 }
 0x14e   :  { %p602_p7 = pnand %p600_p6, %p597_p5 }
 0x150   :  { %605 = shalt.err (!%p602_p7)
}
 0x151   :  { %s609_s9 = smov 128   ;;  %s610_s10 = smov 8  }
 0x152   :  { %469 = dma.vmem_to_hbm [thread:$0]  %s962_s4, 2048, %s1001_s6, [#allocation3], %s609_s9, %s609_s9, %s610_s10  }
 0x153   :  { %606 = dma.done.wait [#allocation3], 2048  }
 0x154   :  { %607 = vsyncadd [#allocation3], 4294965248 }
 0x155   :  { %473 = vsyncpa [#allocation3], 1 }

</bundles_post_ra>
